<compile_context>
chip_gen: v7x
topology: tpu7x:2x2x1
jax: 0.10.0
libtpu: 0.0.40
codegen_flags: <defaults>
</compile_context>

<pallas_src>
import jax
import jax.numpy as jnp
from jax.experimental import pallas as pl
from jax.experimental.pallas import tpu as pltpu

KTAPS = 9      # 3x3 deformable kernel taps
NCORNERS = 4   # bilinear corners


# ----------------------------------------------------------------------------- kernel
def _deform_conv_kernel(w_ref, s_ref, out_ref):
    """Per (batch, spatial-tile) body.

    w_ref  : (n_rows, 1)   f32   deform-conv weights, row = (chan, tap)   (grid-resident)
    s_ref  : (n_rows, TM)  bf16  bilinear-sampled features, pixels on lanes
    out_ref: (1, TM)       f32   sigmoid(deform_conv) for TM pixels (lane dense)
    """
    # Single upcast (v5e VPU has no bf16 arithmetic); accumulation stays f32.
    s = s_ref[...].astype(jnp.float32)
    # (chan, tap) contraction: VPU multiply by a broadcast weight column + XLU sublane reduce.
    conv = jnp.sum(w_ref[...] * s, axis=0, keepdims=True)            # (1, TM)
    # Sigmoid: exp on the EUP, reciprocal on the EUP approx path (keeps VPU slot clear).
    out_ref[...] = pl.reciprocal(1.0 + jnp.exp(-conv), approx=True)


# ------------------------------------------------------------------- host-side glue (index math)
def _build_bilinear_corners(offset, H, W):
    """Sparse bilinear-sampling metadata from the deform-conv offsets.

    offset: (B, 2*9, H, W), mmcv ordering: offset[:, 2k] = dy, offset[:, 2k+1] = dx for tap k.
    Returns idx (B, 9, 4, HW) int32 flat indices and wgt (B, 9, 4, HW) f32 corner weights
    (zeroed for out-of-bounds corners == zero padding).
    """
    # TODO(synk): the mmcv offset channel convention / zero-padding semantics are mirrored
    # here but not cross-validated against the PyTorch DeformConv2d op in-script.
    B = offset.shape[0]
    HW = H * W
    hh, ww = jnp.meshgrid(jnp.arange(H, dtype=jnp.float32),
                          jnp.arange(W, dtype=jnp.float32), indexing="ij")
    idx_list, w_list = [], []
    for k in range(KTAPS):
        ki, kj = k // 3, k % 3
        dy = offset[:, 2 * k]            # (B, H, W)
        dx = offset[:, 2 * k + 1]
        py = hh[None] + (ki - 1) + dy    # stride=1, padding=1, dilation=1
        px = ww[None] + (kj - 1) + dx
        y0 = jnp.floor(py)
        x0 = jnp.floor(px)
        ly = py - y0
        lx = px - x0
        for cy, cx, wt in ((y0,       x0,       (1.0 - ly) * (1.0 - lx)),
                           (y0,       x0 + 1.0, (1.0 - ly) * lx),
                           (y0 + 1.0, x0,       ly * (1.0 - lx)),
                           (y0 + 1.0, x0 + 1.0, ly * lx)):
            valid = (cy >= 0) & (cy < H) & (cx >= 0) & (cx < W)
            flat = (jnp.clip(cy, 0, H - 1).astype(jnp.int32) * W
                    + jnp.clip(cx, 0, W - 1).astype(jnp.int32))
            idx_list.append(flat.reshape(B, HW))
            w_list.append(jnp.where(valid, wt, 0.0).reshape(B, HW))
    idx = jnp.stack(idx_list, axis=1).reshape(B, KTAPS, NCORNERS, HW)
    wgt = jnp.stack(w_list, axis=1).reshape(B, KTAPS, NCORNERS, HW)
    return idx, wgt


def _topk_channels(x, topk):
    """x: (B, C, H, W) -> (B, topk, HW), channel top-k values (sorted descending), HW minor."""
    # TODO(synk): top-k / sort has no clean Pallas TPU lowering; stays in XLA (lax.top_k).
    B, C, H, W = x.shape
    xt = jnp.transpose(x, (0, 2, 3, 1)).astype(jnp.float32)           # (B, H, W, C)
    vals = jax.lax.top_k(xt, topk)[0].reshape(B, H * W, topk)         # (B, HW, topk)
    return jnp.transpose(vals, (0, 2, 1))                             # cheap: topk*HW elements


def _bilinear_sample(x_topk_t, idx, bwt):
    """Gather 4 corners per tap and combine them (in f32) with HW kept minor.

    x_topk_t: (B, topk, HW); idx, bwt: (B, 9, 4, HW)
    Returns (B, topk*9, HW), rows ordered (chan, tap).
    """
    # TODO(synk): arbitrary data-dependent gather is not efficiently expressible inside a
    # TPU Pallas kernel; the gather stays in XLA (Option B — in-kernel gather from a
    # VMEM-resident x_topk — would remove this HBM hand-off entirely).
    B, topk, HW = x_topk_t.shape
    flat_idx = idx.reshape(B, -1)                                     # (B, 9*4*HW)
    gathered = jax.vmap(lambda xb, ib: jnp.take(xb, ib, axis=1))(x_topk_t, flat_idx)
    gathered = gathered.reshape(B, topk, KTAPS, NCORNERS, HW)
    sampled = jnp.einsum("bkrp,bckrp->bckp", bwt, gathered)           # corner combine (f32)
    return sampled.reshape(B, topk * KTAPS, HW)


def _choose_tiling(hw, batch):
    """Pad HW to a lane-friendly size and pick the spatial tile (lane-dense, pipelined)."""
    pad_unit = 512 if hw >= 512 else 128
    hw_pad = -(-hw // pad_unit) * pad_unit
    candidates = (8192, 4096, 2048, 1024, 512, 256, 128)
    divisors = [t for t in candidates if hw_pad % t == 0]             # 128 always divides
    for t in divisors:                      # keep >= 4 grid points so v7x's 2 TCs both work
        if batch * (hw_pad // t) >= 4:
            return hw_pad, t
    return hw_pad, divisors[-1]


# ----------------------------------------------------------------------------- forward
def deform_space_attention_v4(x, offset, weight, *, tm=None, compute_dtype=jnp.bfloat16):
    """x: (B, C, H, W), offset: (B, 18, H, W), weight: (1, topk, 3, 3). Returns (B, 1, H, W) f32."""
    B, C, H, W = x.shape
    topk = weight.shape[1]
    HW = H * W
    assert offset.shape == (B, 2 * KTAPS, H, W)
    n_rows = topk * KTAPS

    # 1) channel top-k (XLA), already transposed to HW-minor layout
    x_topk_t = _topk_channels(x, topk)                                # (B, topk, HW)

    # 2) sparse bilinear sampling metadata (indices + corner weights), O(HW)
    idx, bwt = _build_bilinear_corners(offset.astype(jnp.float32), H, W)

    # 3) gather + corner combine in XLA; compact bf16 hand-off to the kernel
    sampled = _bilinear_sample(x_topk_t, idx, bwt).astype(compute_dtype)   # (B, topk*9, HW)

    # 4) tiling: pad HW so every tile is lane-dense and pipelined (no masked-store tail)
    if tm is None:
        hw_pad, tm = _choose_tiling(HW, B)
    else:
        assert tm % 128 == 0, "spatial tile must be a multiple of 128 (lane-dense stores)"
        hw_pad = -(-HW // tm) * tm
    if hw_pad != HW:
        sampled = jnp.pad(sampled, ((0, 0), (0, 0), (0, hw_pad - HW)))

    # Deform-conv weights as a (chan, tap)-ordered column: wvec[c*9 + k] = w[0, c, k//3, k%3]
    wvec = weight[0].astype(jnp.float32).reshape(n_rows, 1)

    grid = (B, hw_pad // tm)
    itemsize = jnp.dtype(compute_dtype).itemsize
    cost = pl.CostEstimate(
        flops=int(B * hw_pad * (2 * n_rows + 4)),
        transcendentals=int(2 * B * hw_pad),                          # exp + reciprocal
        bytes_accessed=int(sampled.size * itemsize + wvec.size * 4 + B * hw_pad * 4),
    )

    out = pl.pallas_call(
        _deform_conv_kernel,
        out_shape=jax.ShapeDtypeStruct((B, 1, hw_pad), jnp.float32),
        grid_spec=pltpu.PrefetchScalarGridSpec(
            num_scalar_prefetch=0,
            grid=grid,
            in_specs=[
                # conv weights: grid-invariant, stays VMEM-resident
                pl.BlockSpec((n_rows, 1), lambda b, t: (0, 0)),
                # bilinear-sampled features: tile over pixels (lane axis)
                pl.BlockSpec((None, n_rows, tm), lambda b, t: (b, 0, t)),
            ],
            out_specs=pl.BlockSpec((None, 1, tm), lambda b, t: (b, 0, t)),
        ),
        compiler_params=pltpu.CompilerParams(
            dimension_semantics=("parallel", "parallel"),   # batch and spatial tiles independent
            vmem_limit_bytes=32 * 1024 * 1024,              # safe on v5e/v6e/v7x; usage is tiny
        ),
        cost_estimate=cost,
    )(wvec, sampled)

    return out[:, :, :HW].reshape(B, 1, H, W)


# ----------------------------------------------------------------------------- pure-JAX reference
def _reference(x, offset, weight):
    """Mirrors the PyTorch forward: topk -> DeformConv2d(topk, 1, 3x3, pad=1, no bias) -> sigmoid."""
    B, C, H, W = x.shape
    topk = weight.shape[1]
    HW = H * W
    xt = jnp.transpose(x, (0, 2, 3, 1)).astype(jnp.float32)
    x_topk = jax.lax.top_k(xt, topk)[0].reshape(B, HW, topk)                # (B, HW, topk)
    idx, bwt = _build_bilinear_corners(offset.astype(jnp.float32), H, W)    # (B, 9, 4, HW)
    gathered = jax.vmap(lambda xb, ib: xb[ib])(x_topk, idx)                 # (B, 9, 4, HW, topk)
    sampled = jnp.einsum("bkrp,bkrpc->bkpc", bwt, gathered)                 # bilinear combine
    wkc = jnp.transpose(weight[0].astype(jnp.float32), (1, 2, 0)).reshape(KTAPS, topk)
    conv = jnp.einsum("bkpc,kc->bp", sampled, wkc)                          # out_channels=1, no bias
    return jax.nn.sigmoid(conv).reshape(B, 1, H, W)


if __name__ == "__main__":
    B, C, H, W, topk = 2, 8, 16, 16, 4
    key = jax.random.PRNGKey(0)
    kx, koff, kw = jax.random.split(key, 3)

    x = jax.random.normal(kx, (B, C, H, W), jnp.float32)
    offset = 2.0 * jax.random.normal(koff, (B, 2 * KTAPS, H, W), jnp.float32)
    weight = 0.1 * jax.random.normal(kw, (1, topk, 3, 3), jnp.float32)       # DeformConv2d weight, no bias

    ref = _reference(x, offset, weight)

    # f32 hand-off: structural check (tolerance only covers the EUP approx reciprocal)
    out_f32 = jax.block_until_ready(
        deform_space_attention_v4(x, offset, weight, compute_dtype=jnp.float32))
    assert out_f32.shape == (B, 1, H, W)
    assert jnp.allclose(out_f32, ref, atol=2e-3, rtol=2e-3), \
        float(jnp.max(jnp.abs(out_f32 - ref)))

    # bf16 hand-off (default, bandwidth-optimized path); tolerance covers the bf16 cast
    out = jax.block_until_ready(deform_space_attention_v4(x, offset, weight))
    assert out.shape == (B, 1, H, W)
    assert jnp.allclose(out, ref, atol=5e-3, rtol=5e-3), \
        float(jnp.max(jnp.abs(out - ref)))

    print("KERNEL_OK")
</pallas_src>

<mosaic_0001>
module attributes {stable_mosaic.version = 11 : i64} {
  func.func @_deform_conv_kernel(%arg0: i32, %arg1: i32, %arg2: memref<36x1xf32, #tpu.memory_space<vmem>>, %arg3: memref<1x36x128xf32, #tpu.memory_space<vmem>>, %arg4: memref<1x1x128xf32, #tpu.memory_space<vmem>>) attributes {dimension_semantics = [#tpu.dimension_semantics<parallel>, #tpu.dimension_semantics<parallel>], iteration_bounds = array<i64: 2, 2>, scalar_prefetch = 0 : i64, scratch_operands = 0 : i64, tpu.core_type = #tpu.core_type<tc>, window_params = [{pipeline_mode = #tpu.pipeline_mode<synchronous>, transform_indices = @transform_0, window_bounds = array<i64: 36, 1>}, {transform_indices = @transform_1, window_bounds = array<i64: 1, 36, 128>}, {transform_indices = @transform_2, window_bounds = array<i64: 1, 1, 128>}]} {
    %c0 = arith.constant 0 : index
    %c0_0 = arith.constant 0 : index
    %c0_1 = arith.constant 0 : index
    %0 = vector.load %arg3[%c0, %c0_0, %c0_1] : memref<1x36x128xf32, #tpu.memory_space<vmem>>, vector<1x36x128xf32>
    %1 = vector.shape_cast %0 : vector<1x36x128xf32> to vector<36x128xf32>
    %c0_2 = arith.constant 0 : index
    %c0_3 = arith.constant 0 : index
    %2 = vector.load %arg2[%c0_2, %c0_3] : memref<36x1xf32, #tpu.memory_space<vmem>>, vector<36x1xf32>
    %3 = vector.broadcast %2 : vector<36x1xf32> to vector<36x128xf32>
    %4 = arith.mulf %3, %1 : vector<36x128xf32>
    %cst = arith.constant dense<0.000000e+00> : vector<128xf32>
    %5 = vector.multi_reduction <add>, %4, %cst [0] : vector<36x128xf32> to vector<128xf32>
    %6 = vector.shape_cast %5 : vector<128xf32> to vector<1x128xf32>
    %cst_4 = arith.constant 0.000000e+00 : f32
    %7 = vector.broadcast %cst_4 : f32 to vector<1x128xf32>
    %8 = arith.subf %7, %6 : vector<1x128xf32>
    %9 = math.exp %8 : vector<1x128xf32>
    %cst_5 = arith.constant 1.000000e+00 : f32
    %10 = vector.broadcast %cst_5 : f32 to vector<1x128xf32>
    %11 = arith.addf %10, %9 : vector<1x128xf32>
    %12 = tpu.reciprocal %11 {approx = true} : vector<1x128xf32> -> vector<1x128xf32>
    %c0_6 = arith.constant 0 : index
    %c0_7 = arith.constant 0 : index
    %c0_8 = arith.constant 0 : index
    %13 = vector.load %arg4[%c0_6, %c0_7, %c0_8] : memref<1x1x128xf32, #tpu.memory_space<vmem>>, vector<1x1x128xf32>
    %14 = vector.shape_cast %13 : vector<1x1x128xf32> to vector<1x128xf32>
    %15 = vector.shape_cast %12 : vector<1x128xf32> to vector<1x1x128xf32>
    tpu.vector_store %arg4[%c0_6, %c0_7, %c0_8], %15 {strides = array<i32>} : memref<1x1x128xf32, #tpu.memory_space<vmem>>, vector<1x1x128xf32>,
    return
  }
  func.func @transform_0(%arg0: i32, %arg1: i32) -> (i32, i32) {
    %c0_i32 = arith.constant 0 : i32
    %c0_i32_0 = arith.constant 0 : i32
    %c0_i32_1 = arith.constant 0 : i32
    return %c0_i32, %c0_i32_0 : i32, i32
  }
  func.func @transform_1(%arg0: i32, %arg1: i32) -> (i32, i32, i32) {
    %c0_i32 = arith.constant 0 : i32
    %c0_i32_0 = arith.constant 0 : i32
    return %arg0, %c0_i32, %arg1 : i32, i32, i32
  }
  func.func @transform_2(%arg0: i32, %arg1: i32) -> (i32, i32, i32) {
    %c0_i32 = arith.constant 0 : i32
    %c0_i32_0 = arith.constant 0 : i32
    return %arg0, %c0_i32, %arg1 : i32, i32, i32
  }
}

</mosaic_0001>

<bundles_post_ra>
// kernel: tpu_custom_call.1
= control target key start
LH: loop header
LB: loop body
LE: loop exit
PB: predicated region body
PF: predicated region fallthrough
CT: control target
= control target key end

     0   :  { %7 = vsyncpa [#allocation4], 0  ;;  %s726_s0 = inlined_call_operand.vmem [shape: f32[36,1], index: 0, kind: input, shape index: {}]   ;;  %s727_s1 = inlined_call_operand.vmem [shape: f32[2,36,256], index: 1, kind: input, shape index: {}]   ;;  %s728_s2 = inlined_call_operand.hbm [shape: f32[2,1,256], index: 2, kind: output, shape index: {}]  }
   0x1   :  { %9 = vsyncpa [#allocation4 + $0x1], 0  ;;  %s562_s9 = smov 0   ;;  %s564_s10 = smov 0  }
   0x2   :  { %s566_s11 = smov 0   ;;  %s568_s12 = smov 0  }
   0x3   :  { %s570_s13 = smov 0   ;;  %s572_s14 = smov 0  }
   0x4   :  { %s574_s15 = smov 0   ;;  %s576_s16 = smov 0  }
   0x5 LB: > { %s358_s17 = sadd.s32 4294967295, %s543_s16   ;;  %s359_s18 = sadd.s32 4294967294, %s543_s16   ;;  %s543_s16 = sphi %s576_s16, %s15_s16   ;;  %s539_s15 = sphi %s574_s15, %s738_s15   ;;  %s535_s14 = sphi %s572_s14, %s737_s14   ;;  %s531_s13 = sphi %s570_s13, %s736_s13   ;;  %s527_s12 = sphi %s568_s12, %s735_s12   ;;  %s523_s11 = sphi %s566_s11, %s734_s11   ;;  %s519_s10 = sphi %s564_s10, %s733_s10   ;;  %s515_s9 = sphi %s562_s9, %s732_s9  }
   0x6   : > { %s24_s19 = sadd.s32 1, %s535_s14  ;;  %s27_s20 = sadd.s32 1, %s539_s15 }
   0x7   : > { %p25_p0 = scmp.ge.s32.totalorder %s24_s19, 2  ;;  %p64_p1 = scmp.ne.s32.totalorder %s523_s11, %s519_s10 }
   0x8   : > { %p65_p2 = scmp.eq.s32.totalorder %s543_s16, 0  ;;  %p96_p5 = scmp.eq.s32.totalorder %s358_s17, 3 }
   0x9   : > { %s740_s19 = smov (%p25_p0, %s24_s19), 0  ;;  %s742_s20 = smov (!%p25_p0, %s27_s20), %s539_s15 }
   0xa   : > { %s53_s21 = ssub.s32 %s535_s14, %s740_s19  ;;  %p614_p3 = por %p65_p2, %p64_p1 }
   0xb   : > { %p29_p4 = scmp.ge.s32.totalorder %s742_s20, 2  ;;  %p101_p6 = scmp.ne.s32.totalorder %s519_s10, %s515_s9 }
   0xc   : > { %p102_p7 = scmp.eq.s32.totalorder %s359_s18, 3  ;;  %p622_p8 = por %p96_p5, %p64_p1 }
   0xd   : > { %s744_s20 = smov (%p29_p4, %s742_s20), 0  ;;  %s57_s27 = sadd.s32 1, %s523_s11 }
   0xe   : > { %p626_p9 = por %p102_p7, %p101_p6  ;;  %s52_s25 = ssub.s32 %s539_s15, %s744_s20 }
   0xf   : > { %s54_s26 = sor.u32 %s53_s21, %s52_s25  ;;  %p361_p11 = scmp.ge.s32.totalorder %s543_s16, 4 }
  0x10   : > { %p55_p10 = scmp.eq.s32.totalorder %s54_s26, 0 }
  0x11   : > { %121 = sbr.rel (%p361_p11) target bundleno = 34 (0x22), region = 20 }
  0x12   : > { %s634_s28 = scalar_select %p55_p10, %s523_s11, %s57_s27  }
  0x18   : > { %124 = sbr.rel (!%p614_p3) target bundleno = 34 (0x22), region = 24  ;;  %s126_s29 = sand.u32 (%p614_p3), 1, %s523_s11  }
  0x19   : > { %s369_s30 = smul.u32 (%p614_p3), 10, %s539_s15 }
  0x1a   : > { %s368_s3 = smul.u32 (%p614_p3), 40, %s126_s29 }
  0x1b   : > { %s130_s4 = sadd.s32 (%p614_p3), %s535_s14, %s369_s30 }
  0x1c   : > { %s362_s5 = sshll.u32 (%p614_p3), %s130_s4, 3  ;;  %s128_s17 = scalar_lea.vmem (%p614_p3), [#allocation2], %s368_s3 }
  0x1d   : > { %s132_s8 = scalar_lea.vmem (%p614_p3), %s727_s1, %s362_s5 }
  0x1e   : > { %v168_v0 = vld [vmem:[%s132_s8] sm:$0xff] (%p614_p3)  ;;  %v170_v1 = vld [vmem:[%s132_s8 + $0x10] sm:$0xff] (%p614_p3) }
  0x1f   : > { %v172_v2 = vld [vmem:[%s132_s8 + $0x20] sm:$0xff]  ;;  %169 = vst [vmem:[%s128_s17] sm:$0xff] %v168_v0  ;;  %171 = vst [vmem:[%s128_s17 + $0x8] sm:$0xff] %v170_v1  ;;  %v174_v3 = vld [vmem:[%s132_s8 + $0x30] sm:$0xff] }
  0x20   : > { %173 = vst [vmem:[%s128_s17 + $0x10] sm:$0xff] %v172_v2  ;;  %v176_v4 = vld [vmem:[%s132_s8 + $0x40] sm:$0xff]  ;;  %175 = vst [vmem:[%s128_s17 + $0x18] sm:$0xff] %v174_v3 }
  0x21   : > { %177 = vst [vmem:[%s128_s17 + $0x20] sm:$0xff] %v176_v4 }
  0x22 PF: > { %p363_p12 = scmp.ge.s32.totalorder %s543_s16, 1  ;;  %p182_p13 = scmp.lt.s32.totalorder %s543_s16, 5 }
  0x24   : > { %p183_p0 = pnand %p363_p12, %p182_p13 }
  0x25   : > { %v216_v5 = vld [vmem:[%s726_s0 + $0x10] sm:$0xff] (!%p183_p0)  ;;  %v214_v6 = vld [vmem:[%s726_s0] sm:$0xff] (!%p183_p0)  ;;  %v545_v7 = vmov (!%p183_p0), 0   ;;  %v217_v8 = vld [vmem:[%s726_s0 + $0x18] sm:$0xff] (!%p183_p0)  ;;  %s663_s5 = sand.u32 (!%p183_p0), 1, %s519_s10   ;;  %vm252_vm0 = vcmask (!%p183_p0), 1043456  }
  0x26   : > { %186 = sbr.rel (%p183_p0) target bundleno = 235 (0xeb), region = 62  ;;  %444 = vset.pattern.permute.xlu1 (!%p183_p0), %v545_v7  ;;  %443 = vset.pattern.permute.xlu0 (!%p183_p0), %v545_v7  ;;  %v215_v9 = vld [vmem:[%s726_s0 + $0x8] sm:$0xff] (!%p183_p0)  ;;  %v218_v10 = vld [vmem:[%s726_s0 + $0x20] sm:$0xf] (!%p183_p0)  ;;  %s364_s8 = sshll.u32 (!%p183_p0), %s531_s13, 1 }
  0x27   : > { %231 = vperm.xlu1 (!%p183_p0), %444, %v216_v5   ;;  %221 = vperm.xlu0 (!%p183_p0), %443, %v214_v6   ;;  %s370_s6 = smul.u32 (!%p183_p0), 40, %s663_s5  ;;  %s278_s17 = sadd.s32 (!%p183_p0), %s527_s12, %s364_s8 }
  0x28   : > { %s365_s18 = sshll.u32 (!%p183_p0), %s278_s17, 4  ;;  %s208_s21 = scalar_lea.vmem (!%p183_p0), [#allocation3], %s663_s5 }
  0x29   : > { %s191_s7 = scalar_lea.vmem (!%p183_p0), [#allocation2], %s370_s6  ;;  %s282_s22 = sshll.u32 (!%p183_p0), %s208_s21, 4  ;;  %s674_s22 = int_to_ptr.vmem [resolvable:$true] %s282_s22 }
  0x2a   : > { %v209_v13 = vld [vmem:[%s191_s7] sm:$0xff] (!%p183_p0)  ;;  %v210_v14 = vld [vmem:[%s191_s7 + $0x8] sm:$0xff] (!%p183_p0)  ;;  %v211_v15 = vld [vmem:[%s191_s7 + $0x10] sm:$0xff] (!%p183_p0)  ;;  %s672_s27 = scalar_lea.hbm (!%p183_p0), %s728_s2, %s365_s18  ;;  %s268_s29 = scalar_lea.sflag (!%p183_p0), [#allocation4], %s663_s5 }
  0x2b   : > { %236 = vperm.xlu1 (!%p183_p0), %444, %v217_v8   ;;  %226 = vperm.xlu0 (!%p183_p0), %443, %v215_v9   ;;  %v212_v20 = vld [vmem:[%s191_s7 + $0x18] sm:$0xff] (!%p183_p0)  ;;  %v213_v21 = vld [vmem:[%s191_s7 + $0x20] sm:$0xf] (!%p183_p0)  ;;  %s449_s30 = scalar_lea.vmem (!%p183_p0), %s674_s22, 16  ;;  %s546_s12 = smov (!%p183_p0), [#allocation3]  }
  0x2c   : > { %p450_p1 = scmp.ne.s32.totalorder (!%p183_p0), %s674_s22, %s449_s30  ;;  %s453_s13 = sshll.u32 (!%p183_p0), %s546_s12, 4  ;;  %s454_s13 = int_to_ptr.vmem [resolvable:$false] %s453_s13 }
  0x2d   : > { %s455_s3 = scalar_lea.vmem %s454_s13, 32  ;;  %p456_p4 = scmp.lt.s32.totalorder %s674_s22, %s454_s13 }
  0x2e   : > { %p451_p2 = pnand %p450_p1, %p622_p8  ;;  %p457_p5 = scmp.lt.s32.totalorder %s455_s3, %s449_s30 }
  0x2f   : > { %241 = vperm.xlu0 %443, %v218_v10  }
  0x30   : > { %p452_p3 = pneg %p451_p2  ;;  %p458_p6 = por %p457_p5, %p456_p4 }
  0x32   : > { %p459_p7 = pnand %p458_p6, %p452_p3 }
  0xa6   : > { %v232_v11 = vpop.permute.xlu1 %231  ;;  %v222_v12 = vpop.permute.xlu0 %221 }
  0xa7   : > { %v244_v17 = vmul.f32 %v222_v12, %v209_v13  ;;  %v246_v22 = vmul.f32 %v232_v11, %v211_v15 }
  0xaa   : > { %v227_v16 = vpop.permute.xlu0 %226  ;;  %v237_v19 = vpop.permute.xlu1 %236 }
  0xab   : > { %v245_v18 = vmul.f32 %v227_v16, %v210_v14  ;;  %v247_v25 = vmul.f32 %v237_v19, %v212_v20 }
  0xad   : > { %v249_v23 = vadd.f32 %v245_v18, %v244_v17 }
  0xae   : > { %v242_v24 = vpop.permute.xlu0 %241 }
  0xaf   : > { %v250_v26 = vadd.f32 %v249_v23, %v246_v22  ;;  %v248_v27 = vmul.f32 %v242_v24, %v213_v21 }
  0xb1   : > { %v251_v28 = vadd.f32 %v250_v26, %v247_v25  ;;  %v253_v29 = vsel %vm252_vm0, %v248_v27, 0.0 }
  0xb3   : > { %v254_v30 = vadd.f32 %v253_v29, %v251_v28 }
  0xb5   : > { %v255_v31 = vrot.slane %v254_v30, 4 }
  0xb7   : > { %v256_v32 = vadd.f32 %v255_v31, %v254_v30 }
  0xb9   : > { %v257_v33 = vrot.slane %v256_v32, 2 }
  0xbb   : > { %v258_v34 = vadd.f32 %v257_v33, %v256_v32 }
  0xbd   : > { %v259_v35 = vrot.slane %v258_v34, 1 }
  0xbf   : > { %v260_v36 = vadd.f32 %v259_v35, %v258_v34 }
  0xc1   : > { %v261_v37 = vsub.f32 0.0, %v260_v36 }
  0xc3   : > { %v262_v38 = vmul.f32 1.442695, %v261_v37 }
  0xc5   : > { %445 = vpow2.f32 %v262_v38 }
  0xcf   : > { %v446_v39 = vpop.eup %445 }
  0xd0   : > { %v264_v40 = vadd.f32 1.0, %v446_v39 }
  0xd2   : > { %447 = vrcp.f32 %v264_v40 }
  0xdc   : > { %v448_v41 = vpop.eup %447 }
  0xdd   : > { %266 = vst [vmem:[%s208_s21] sm:$0x1] %v448_v41 }
  0xde   : > { %462 = shalt.err (!%p459_p7)
}
  0xdf   : > { %s463_s4 = scalar_lea.hbm %s672_s27, 16  ;;  %s467_s7 = scalar_lea.hbm %s728_s2, 64 }
  0xe0   : > { %p464_p10 = scmp.ne.s32.totalorder %s672_s27, %s463_s4  ;;  %p468_p13 = scmp.lt.u32.totalorder %s672_s27, %s728_s2 }
  0xe1   : > { %p469_p0 = scmp.lt.u32.totalorder %s467_s7, %s463_s4  ;;  %p471_p2 = scmp.lt.u32.totalorder %s463_s4, %s672_s27 }
  0xe2   : > { %p465_p11 = pnand %p464_p10, %p622_p8 }
  0xe3   : > { %p470_p1 = por %p469_p0, %p468_p13 }
  0xe4   : > { %p466_p12 = pneg %p465_p11 }
  0xe5   : > { %p472_p3 = por %p471_p2, %p470_p1 }
  0xe7   : > { %p473_p4 = pnand %p472_p3, %p466_p12 }
  0xe9   : > { %476 = shalt.err (!%p473_p4)
}
  0xea   : > { %371 = dma.vmem_to_hbm [thread:$0]  (%p622_p8), %s674_s22, 16, %s672_s27, %s268_s29  }
  0xeb PF: > { %p377_p5 = scmp.ge.s32.totalorder %s543_s16, 2  ;;  %s294_s18 = sand.u32 1, %s515_s9  }
  0xec   : > { %s295_s21 = scalar_lea.sflag [#allocation4], %s294_s18 }
  0xed   : > { %p374_p6 = pnand %p377_p5, %p626_p9 }
  0xef   : > { %510 = dma.done.wait (!%p374_p6), %s295_s21, 16  }
  0xf0   : > { %512 = vsyncadd (!%p374_p6), %s295_s21, 4294967280  ;;  %s15_s16 = sadd.s32 1, %s543_s16   ;;  %s732_s9 = smov %s519_s10 }
  0xf1   : > { %p12_p7 = scmp.ge.s32.totalorder %s15_s16, 6   ;;  %s733_s10 = smov %s523_s11 }
  0xf2   : > { %s734_s11 = smov %s634_s28  ;;  %s735_s12 = smov %s535_s14 }
  0xf3   : > { %s736_s13 = smov %s539_s15  ;;  %s737_s14 = smov %s740_s19 }
  0xf4   : > { %s738_s15 = smov %s744_s20  ;;  %14 = sbr.rel (!%p12_p7) target bundleno = 5 (0x5), region = 106 }
  0xfb   :  { %299 = vsyncpa [#allocation4], 1 }
  0xfc   :  { %301 = vsyncpa [#allocation4 + $0x1], 1 }

</bundles_post_ra>
